<compile_context>
chip_gen: v7x
topology: tpu7x:2x2x1
jax: 0.10.0
libtpu: 0.0.40
codegen_flags: <defaults>
</compile_context>

<pallas_src>
import functools

import jax
import jax.numpy as jnp
from jax import lax
from jax.experimental import pallas as pl
from jax.experimental.pallas import tpu as pltpu


def _mlp_kernel(x_ref, w_ref, b_ref, o_ref):
    """One (batch, pixel-tile) grid step.

    x_ref: (C, tl)   channel-major pixel tile (direct slice of NCHW memory)
    w_ref: (C, E)    transposed Linear weight
    b_ref: (1, E)    Linear bias (f32)
    o_ref: (tl, E)   output tile, already in (N, L, E) layout
    """
    acc = lax.dot_general(
        x_ref[...],
        w_ref[...],
        dimension_numbers=(((0,), (0,)), ((), ())),  # contract channel axis
        preferred_element_type=jnp.float32,
    )
    o_ref[...] = (acc + b_ref[...]).astype(o_ref.dtype)


def mlp_forward(x_nchw, weight, bias, *, tile_l=512, compute_dtype=None,
                out_dtype=None):
    """MLP.forward: (N, C, H, W) -> (N, H*W, E).

    weight: (E, C) nn.Linear weight, bias: (E,).
    """
    N, C, H, W = x_nchw.shape
    E = weight.shape[0]
    L = H * W
    out_dtype = out_dtype or x_nchw.dtype

    # Free view: flatten(2).  The transpose(1, 2) happens inside the kernel.
    x_flat = x_nchw.reshape(N, C, L)
    w_t = jnp.transpose(weight, (1, 0))          # (C, E), tiny one-time op
    b2 = bias.reshape(1, E).astype(jnp.float32)  # added to f32 accumulator

    if compute_dtype is not None:
        x_flat = x_flat.astype(compute_dtype)
        w_t = w_t.astype(compute_dtype)

    itemsize = jnp.dtype(x_flat.dtype).itemsize

    # Pixel tile: multiple of 128 (lane-dense), as large as a conservative
    # double-buffered VMEM budget allows (safe on v5e/v6e/v7x).
    tl = max(128, min(tile_l, pl.cdiv(L, 128) * 128))
    vmem_budget = 24 * 1024 * 1024

    def _footprint(t):
        # 2x double-buffered x and out tiles + 2x resident weight buffer.
        return (2 * (C * t + t * E) + 2 * C * E) * itemsize

    while tl > 128 and _footprint(tl) > vmem_budget:
        tl //= 2
    tl = max(128, (tl // 128) * 128)

    # Ragged pixel count: pad L up to a tile multiple, slice after.
    Lp = pl.cdiv(L, tl) * tl
    if Lp != L:
        x_flat = jnp.pad(x_flat, ((0, 0), (0, 0), (0, Lp - L)))

    grid = (N, Lp // tl)

    cost = pl.CostEstimate(
        flops=2 * N * L * C * E,
        transcendentals=0,
        bytes_accessed=(x_flat.size * itemsize + w_t.size * itemsize
                        + b2.size * 4
                        + N * Lp * E * jnp.dtype(out_dtype).itemsize),
    )

    out = pl.pallas_call(
        _mlp_kernel,
        out_shape=jax.ShapeDtypeStruct((N, Lp, E), out_dtype),
        grid_spec=pltpu.PrefetchScalarGridSpec(
            num_scalar_prefetch=0,
            grid=grid,
            in_specs=[
                pl.BlockSpec((None, C, tl), lambda n, l: (n, 0, l)),
                pl.BlockSpec((C, E), lambda n, l: (0, 0)),
                pl.BlockSpec((1, E), lambda n, l: (0, 0)),
            ],
            out_specs=pl.BlockSpec((None, tl, E), lambda n, l: (n, l, 0)),
        ),
        compiler_params=pltpu.CompilerParams(
            dimension_semantics=("parallel", "parallel"),
            vmem_limit_bytes=32 * 1024 * 1024,  # raise v5e's 16 MiB default
        ),
        cost_estimate=cost,
    )(x_flat, w_t, b2)

    if Lp != L:
        out = out[:, :L, :]
    return out


def _reference_forward(x_nchw, weight, bias):
    N, C, H, W = x_nchw.shape
    xt = jnp.transpose(x_nchw.reshape(N, C, H * W), (0, 2, 1))  # (N, L, C)
    return jnp.einsum("nlc,ec->nle", xt, weight,
                      precision=lax.Precision.HIGHEST) + bias[None, None, :]


if __name__ == "__main__":
    # Small shapes consistent with the module: input_dim=256, embed_dim=128.
    N, C, H, W = 2, 256, 16, 16
    E = 128

    key = jax.random.PRNGKey(0)
    kx, kw, kb = jax.random.split(key, 3)
    x = jax.random.normal(kx, (N, C, H, W), dtype=jnp.float32)
    weight = jax.random.normal(kw, (E, C), dtype=jnp.float32) * 0.05
    bias = 0.1 * jax.random.normal(kb, (E,), dtype=jnp.float32)

    ref = _reference_forward(x, weight, bias)

    # f32 path (matches module semantics).
    out = jax.block_until_ready(
        jax.jit(functools.partial(mlp_forward))(x, weight, bias))
    assert out.shape == (N, H * W, E)
    assert jnp.allclose(out, ref, atol=1e-3, rtol=1e-3)

    # bf16 compute path (HBM-bandwidth optimization), f32 accumulation/output.
    out_bf16 = jax.block_until_ready(
        jax.jit(functools.partial(mlp_forward, compute_dtype=jnp.bfloat16))(
            x, weight, bias))
    assert out_bf16.shape == (N, H * W, E)
    assert jnp.allclose(out_bf16, ref, atol=5e-2, rtol=5e-2)

    print("KERNEL_OK")
</pallas_src>

<mosaic_0001>
module attributes {stable_mosaic.version = 11 : i64} {
  func.func @_mlp_kernel(%arg0: i32, %arg1: i32, %arg2: memref<1x256x256xf32, #tpu.memory_space<vmem>>, %arg3: memref<256x128xf32, #tpu.memory_space<vmem>>, %arg4: memref<1x128xf32, #tpu.memory_space<vmem>>, %arg5: memref<1x256x128xf32, #tpu.memory_space<vmem>>) attributes {dimension_semantics = [#tpu.dimension_semantics<parallel>, #tpu.dimension_semantics<parallel>], iteration_bounds = array<i64: 2, 1>, scalar_prefetch = 0 : i64, scratch_operands = 0 : i64, tpu.core_type = #tpu.core_type<tc>, window_params = [{transform_indices = @transform_0, window_bounds = array<i64: 1, 256, 256>}, {pipeline_mode = #tpu.pipeline_mode<synchronous>, transform_indices = @transform_1, window_bounds = array<i64: 256, 128>}, {pipeline_mode = #tpu.pipeline_mode<synchronous>, transform_indices = @transform_2, window_bounds = array<i64: 1, 128>}, {transform_indices = @transform_3, window_bounds = array<i64: 1, 256, 128>}]} {
    %c0 = arith.constant 0 : index
    %c0_0 = arith.constant 0 : index
    %c0_1 = arith.constant 0 : index
    %0 = vector.load %arg2[%c0, %c0_0, %c0_1] : memref<1x256x256xf32, #tpu.memory_space<vmem>>, vector<1x256x256xf32>
    %1 = vector.shape_cast %0 : vector<1x256x256xf32> to vector<256x256xf32>
    %c0_2 = arith.constant 0 : index
    %c0_3 = arith.constant 0 : index
    %2 = vector.load %arg3[%c0_2, %c0_3] : memref<256x128xf32, #tpu.memory_space<vmem>>, vector<256x128xf32>
    %cst = arith.constant dense<0.000000e+00> : vector<256x128xf32>
    %3 = tpu.matmul %1, %2, %cst {dimension_numbers = #tpu.dot_dimension_numbers<[0], [0], [1], [1], [0, 1, 1, 1], [], []>} : vector<256x256xf32>, vector<256x128xf32>, vector<256x128xf32> -> vector<256x128xf32>
    %c0_4 = arith.constant 0 : index
    %c0_5 = arith.constant 0 : index
    %4 = vector.load %arg4[%c0_4, %c0_5] : memref<1x128xf32, #tpu.memory_space<vmem>>, vector<1x128xf32>
    %5 = vector.broadcast %4 : vector<1x128xf32> to vector<256x128xf32>
    %6 = arith.addf %3, %5 : vector<256x128xf32>
    %c0_6 = arith.constant 0 : index
    %c0_7 = arith.constant 0 : index
    %c0_8 = arith.constant 0 : index
    %7 = vector.load %arg5[%c0_6, %c0_7, %c0_8] : memref<1x256x128xf32, #tpu.memory_space<vmem>>, vector<1x256x128xf32>
    %8 = vector.shape_cast %7 : vector<1x256x128xf32> to vector<256x128xf32>
    %9 = vector.shape_cast %6 : vector<256x128xf32> to vector<1x256x128xf32>
    tpu.vector_store %arg5[%c0_6, %c0_7, %c0_8], %9 {strides = array<i32>} : memref<1x256x128xf32, #tpu.memory_space<vmem>>, vector<1x256x128xf32>,
    return
  }
  func.func @transform_0(%arg0: i32, %arg1: i32) -> (i32, i32, i32) {
    %c0_i32 = arith.constant 0 : i32
    %c0_i32_0 = arith.constant 0 : i32
    return %arg0, %c0_i32, %arg1 : i32, i32, i32
  }
  func.func @transform_1(%arg0: i32, %arg1: i32) -> (i32, i32) {
    %c0_i32 = arith.constant 0 : i32
    %c0_i32_0 = arith.constant 0 : i32
    %c0_i32_1 = arith.constant 0 : i32
    return %c0_i32, %c0_i32_0 : i32, i32
  }
  func.func @transform_2(%arg0: i32, %arg1: i32) -> (i32, i32) {
    %c0_i32 = arith.constant 0 : i32
    %c0_i32_0 = arith.constant 0 : i32
    %c0_i32_1 = arith.constant 0 : i32
    return %c0_i32, %c0_i32_0 : i32, i32
  }
  func.func @transform_3(%arg0: i32, %arg1: i32) -> (i32, i32, i32) {
    %c0_i32 = arith.constant 0 : i32
    %c0_i32_0 = arith.constant 0 : i32
    return %arg0, %arg1, %c0_i32 : i32, i32, i32
  }
}

</mosaic_0001>

<bundles_post_ra>
// kernel: mlp_forward.1
= control target key start
LH: loop header
LB: loop body
LE: loop exit
PB: predicated region body
PF: predicated region fallthrough
CT: control target
= control target key end

     0   :  { %8 = vsyncpa [#allocation3], 0  ;;  %s1650_s0 = inlined_call_operand.vmem [shape: f32[2,256,256], index: 0, kind: input, shape index: {}]   ;;  %s1651_s1 = inlined_call_operand.vmem [shape: f32[256,128], index: 1, kind: input, shape index: {}]   ;;  %s1652_s2 = inlined_call_operand.vmem [shape: f32[1,128], index: 2, kind: input, shape index: {}]   ;;  %s1653_s3 = inlined_call_operand.hbm [shape: f32[2,256,128], index: 3, kind: output, shape index: {}]  }
   0x1   :  { %10 = vsyncpa [#allocation3 + $0x1], 0  ;;  %s1265_s12 = smov 0   ;;  %s1267_s13 = smov 0  }
   0x2   :  { %s1269_s14 = smov 0   ;;  %s1271_s15 = smov 0  }
   0x3   :  { %s1273_s16 = smov 0   ;;  %s1275_s17 = smov 0  }
   0x4 LB: > { %s783_s18 = sadd.s32 4294967295, %s1239_s17   ;;  %s784_s19 = sadd.s32 4294967294, %s1239_s17   ;;  %s1239_s17 = sphi %s1275_s17, %s16_s17   ;;  %s1235_s16 = sphi %s1273_s16, %s1660_s16   ;;  %s1231_s15 = sphi %s1271_s15, %s1659_s15   ;;  %s1227_s14 = sphi %s1269_s14, %s1658_s14   ;;  %s1223_s13 = sphi %s1267_s13, %s1657_s13   ;;  %s1219_s12 = sphi %s1265_s12, %s1656_s12  }
   0x5   : > { %s28_s20 = sadd.s32 1, %s1235_s16  ;;  %s107_s21 = sadd.s32 1, %s1227_s14 }
   0x6   : > { %p30_p0 = scmp.ge.s32.totalorder %s28_s20, 2  ;;  %p117_p1 = scmp.ne.s32.totalorder %s1227_s14, %s1223_s13 }
   0x7   : > { %p118_p2 = scmp.eq.s32.totalorder %s783_s18, 1  ;;  %p123_p3 = scmp.ne.s32.totalorder %s1223_s13, %s1219_s12 }
   0x8   : > { %s1662_s20 = smov (%p30_p0, %s28_s20), 0  ;;  %p124_p5 = scmp.eq.s32.totalorder %s784_s19, 1 }
   0x9   : > { %p1305_p4 = por %p118_p2, %p117_p1  ;;  %s102_s23 = ssub.s32 %s1235_s16, %s1662_s20 }
   0xa   : > { %p787_p6 = scmp.ge.s32.totalorder %s1239_s17, 1  ;;  %p105_p7 = scmp.eq.s32.totalorder %s102_s23, 0 }
   0xb   : > { %p1312_p8 = por %p124_p5, %p123_p3  ;;  %p161_p9 = scmp.lt.s32.totalorder %s1239_s17, 3 }
   0xc   : > { %s1318_s25 = scalar_select %p105_p7, %s1227_s14, %s107_s21  }
   0xd   : > { %p162_p10 = pnand %p787_p6, %p161_p9 }
   0xe   : > { %p190_p11 = scmp.lt.s32.totalorder (!%p162_p10), %s1231_s15, 1  ;;  %v264_v0 = vld [vmem:[%s1651_s1] sm:$0xff] (!%p162_p10)  ;;  %v265_v1 = vld [vmem:[%s1651_s1 + $0x8] sm:$0xff] (!%p162_p10)  ;;  %v266_v2 = vld [vmem:[%s1651_s1 + $0x10] sm:$0xff] (!%p162_p10)  ;;  %v1241_v3 = vmov (!%p162_p10), 0.0|0.0   ;;  %s1242_s19 = smov (!%p162_p10), [#allocation2]  }
   0xf   : > { %165 = sbr.rel (%p162_p10) target bundleno = 450 (0x1c2), region = 32  ;;  %799 = vmatprep.subr.bf16.mxu0 (!%p162_p10), %v1241_v3  ;;  %847 = vmatprep.subr.bf16.mxu1 (!%p162_p10), %v1241_v3  ;;  %v800_v4 = vpack.c.bf16 (!%p162_p10), %v265_v1, %v264_v0  ;;  %v267_v5 = vld [vmem:[%s1651_s1 + $0x18] sm:$0xff] (!%p162_p10)  ;;  %v268_v7 = vld [vmem:[%s1651_s1 + $0x20] sm:$0xff] (!%p162_p10)  ;;  %v269_v8 = vld [vmem:[%s1651_s1 + $0x28] sm:$0xff] (!%p162_p10)  ;;  %s1165_s21 = sshll.u32 (!%p162_p10), %s1242_s19, 4  ;;  %s1166_s21 = int_to_ptr.vmem [resolvable:$false] %s1165_s21 }
  0x10   : > { %v803_v6 = vpack.c.bf16 (!%p162_p10), %v267_v5, %v266_v2  ;;  %v270_v12 = vld [vmem:[%s1651_s1 + $0x30] sm:$0xff] (!%p162_p10)  ;;  %v806_v17 = vpack.c.bf16 (!%p162_p10), %v269_v8, %v268_v7  ;;  %v271_v21 = vld [vmem:[%s1651_s1 + $0x38] sm:$0xff] (!%p162_p10)  ;;  %v272_v29 = vld [vmem:[%s1651_s1 + $0x40] sm:$0xff] (!%p162_p10)  ;;  %s1167_s26 = scalar_lea.vmem (!%p162_p10), %s1166_s21, 8192 }
  0x11   : > { %801 = vmatpush1.bf16.msra.mxu0 (!%p162_p10), %v800_v4  ;;  %863 = vmatpush1.bf16.msra.mxu1 (!%p162_p10), %v800_v4  ;;  %v809_v28 = vpack.c.bf16 (!%p162_p10), %v271_v21, %v270_v12  ;;  %v273_v30 = vld [vmem:[%s1651_s1 + $0x48] sm:$0xff] (!%p162_p10)  ;;  %v274_v38 = vld [vmem:[%s1651_s1 + $0x50] sm:$0xff] (!%p162_p10)  ;;  %v275_v39 = vld [vmem:[%s1651_s1 + $0x58] sm:$0xff] (!%p162_p10) }
  0x12   : > { %802 = vmatprep.subr.bf16.mxu0 (!%p162_p10), %v1241_v3  ;;  %848 = vmatprep.subr.bf16.mxu1 (!%p162_p10), %v1241_v3  ;;  %v812_v37 = vpack.c.bf16 (!%p162_p10), %v273_v30, %v272_v29  ;;  %v815_v46 = vpack.c.bf16 (!%p162_p10), %v275_v39, %v274_v38  ;;  %v276_v47 = vld [vmem:[%s1651_s1 + $0x60] sm:$0xff] (!%p162_p10)  ;;  %v277_v48 = vld [vmem:[%s1651_s1 + $0x68] sm:$0xff] (!%p162_p10)  ;;  %v278_v56 = vld [vmem:[%s1651_s1 + $0x70] sm:$0xff] (!%p162_p10) }
  0x13   : > { %v818_v55 = vpack.c.bf16 (!%p162_p10), %v277_v48, %v276_v47  ;;  %v279_v57 = vld [vmem:[%s1651_s1 + $0x78] sm:$0xff] (!%p162_p10)  ;;  %v280_v1 = vld [vmem:[%s1651_s1 + $0x80] sm:$0xff] (!%p162_p10)  ;;  %v281_v2 = vld [vmem:[%s1651_s1 + $0x88] sm:$0xff] (!%p162_p10) }
  0x14   : > { %v821_v0 = vpack.c.bf16 (!%p162_p10), %v279_v57, %v278_v56  ;;  %v283_v12 = vld [vmem:[%s1651_s1 + $0x98] sm:$0xff] (!%p162_p10)  ;;  %v285_v21 = vld [vmem:[%s1651_s1 + $0xa8] sm:$0xff] (!%p162_p10)  ;;  %v286_v29 = vld [vmem:[%s1651_s1 + $0xb0] sm:$0xff] (!%p162_p10) }
  0x15   : > { %804 = vmatpush1.bf16.msra.mxu0 (!%p162_p10), %v803_v6  ;;  %864 = vmatpush1.bf16.msra.mxu1 (!%p162_p10), %v803_v6  ;;  %v287_v30 = vld [vmem:[%s1651_s1 + $0xb8] sm:$0xff] (!%p162_p10)  ;;  %v288_v38 = vld [vmem:[%s1651_s1 + $0xc0] sm:$0xff] (!%p162_p10)  ;;  %v289_v39 = vld [vmem:[%s1651_s1 + $0xc8] sm:$0xff] (!%p162_p10) }
  0x16   : > { %s191_s7 = scalar_select %p190_p11, %s1231_s15, 1  ;;  %805 = vmatprep.subr.bf16.mxu0 %v1241_v3  ;;  %849 = vmatprep.subr.bf16.mxu1 %v1241_v3  ;;  %v290_v47 = vld [vmem:[%s1651_s1 + $0xd0] sm:$0xff]  ;;  %v291_v48 = vld [vmem:[%s1651_s1 + $0xd8] sm:$0xff]  ;;  %v292_v56 = vld [vmem:[%s1651_s1 + $0xe0] sm:$0xff] }
  0x17   : > { %v293_v57 = vld [vmem:[%s1651_s1 + $0xe8] sm:$0xff] }
  0x18   : > { %s797_s8 = sshll.u32 %s191_s7, 9  ;;  %s798_s7 = sshll.u32 %s1231_s15, 12 }
  0x19   : > { %s1347_s23 = scalar_lea.vmem %s1650_s0, %s797_s8  ;;  %807 = vmatpush1.bf16.msra.mxu0 %v806_v17  ;;  %865 = vmatpush1.bf16.msra.mxu1 %v806_v17  ;;  %s1594_s11 = scalar_lea.hbm %s1653_s3, %s798_s7 }
  0x1a   : > { %v232_v9 = vld [vmem:[%s1347_s23 + $0x100] sm:$0xff]  ;;  %v233_v10 = vld [vmem:[%s1347_s23 + $0x108] sm:$0xff]  ;;  %v234_v15 = vld [vmem:[%s1347_s23 + $0x110] sm:$0xff]  ;;  %808 = vmatprep.subr.bf16.mxu0 %v1241_v3  ;;  %850 = vmatprep.subr.bf16.mxu1 %v1241_v3 }
  0x1b   : > { %v200_v11 = vld [vmem:[%s1347_s23] sm:$0xff]  ;;  %v937_v13 = vpack.i.bf16 %v233_v10, %v232_v9  ;;  %v201_v14 = vld [vmem:[%s1347_s23 + $0x8] sm:$0xff]  ;;  %v235_v16 = vld [vmem:[%s1347_s23 + $0x118] sm:$0xff]  ;;  %v824_v10 = vpack.c.bf16 %v281_v2, %v280_v1 }
  0x1c   : > { %v1049_v18 = vpack.i.bf16 %v201_v14, %v200_v11  ;;  %v202_v19 = vld [vmem:[%s1347_s23 + $0x10] sm:$0xff]  ;;  %v203_v20 = vld [vmem:[%s1347_s23 + $0x18] sm:$0xff]  ;;  %v939_v22 = vpack.i.bf16 %v235_v16, %v234_v15  ;;  %v236_v24 = vld [vmem:[%s1347_s23 + $0x120] sm:$0xff] }
  0x1d   : > { %938 = vxpose.xlu0.b32.start [1/16] %v937_v13, 128  ;;  %v1051_v23 = vpack.i.bf16 %v203_v20, %v202_v19  ;;  %v237_v25 = vld [vmem:[%s1347_s23 + $0x128] sm:$0xff]  ;;  %v204_v26 = vld [vmem:[%s1347_s23 + $0x20] sm:$0xff]  ;;  %v238_v33 = vld [vmem:[%s1347_s23 + $0x130] sm:$0xff]  ;;  %810 = vmatpush1.bf16.msra.mxu0 %v809_v28 }
  0x1e   : > { %1050 = vxpose.xlu1.b32.start [1/16] %v1049_v18, 128  ;;  %v205_v27 = vld [vmem:[%s1347_s23 + $0x28] sm:$0xff]  ;;  %v941_v31 = vpack.i.bf16 %v237_v25, %v236_v24  ;;  %v239_v34 = vld [vmem:[%s1347_s23 + $0x138] sm:$0xff]  ;;  %v206_v35 = vld [vmem:[%s1347_s23 + $0x30] sm:$0xff]  ;;  %866 = vmatpush1.bf16.msra.mxu1 %v809_v28 }
  0x1f   : > { %v1053_v32 = vpack.i.bf16 %v205_v27, %v204_v26  ;;  %v207_v36 = vld [vmem:[%s1347_s23 + $0x38] sm:$0xff]  ;;  %811 = vmatprep.subr.bf16.mxu0 %v1241_v3  ;;  %851 = vmatprep.subr.bf16.mxu1 %v1241_v3  ;;  %v943_v40 = vpack.i.bf16 %v239_v34, %v238_v33  ;;  %v240_v42 = vld [vmem:[%s1347_s23 + $0x140] sm:$0xff]  ;;  %v241_v43 = vld [vmem:[%s1347_s23 + $0x148] sm:$0xff] }
  0x20   : > { %v1055_v41 = vpack.i.bf16 %v207_v36, %v206_v35  ;;  %v208_v44 = vld [vmem:[%s1347_s23 + $0x40] sm:$0xff]  ;;  %v209_v45 = vld [vmem:[%s1347_s23 + $0x48] sm:$0xff]  ;;  %v945_v49 = vpack.i.bf16 %v241_v43, %v240_v42  ;;  %v242_v51 = vld [vmem:[%s1347_s23 + $0x150] sm:$0xff] }
  0x21   : > { %940 = vxpose.xlu0.b32.cont [2/16] %v939_v22, 128  ;;  %813 = vmatpush1.bf16.msra.mxu0 %v812_v37  ;;  %v1057_v50 = vpack.i.bf16 %v209_v45, %v208_v44  ;;  %v243_v52 = vld [vmem:[%s1347_s23 + $0x158] sm:$0xff]  ;;  %v210_v53 = vld [vmem:[%s1347_s23 + $0x50] sm:$0xff]  ;;  %v244_v60 = vld [vmem:[%s1347_s23 + $0x160] sm:$0xff] }
  0x22   : > { %1052 = vxpose.xlu1.b32.cont [2/16] %v1051_v23, 128  ;;  %867 = vmatpush1.bf16.msra.mxu1 %v812_v37  ;;  %v211_v54 = vld [vmem:[%s1347_s23 + $0x58] sm:$0xff]  ;;  %v947_v58 = vpack.i.bf16 %v243_v52, %v242_v51  ;;  %v245_v61 = vld [vmem:[%s1347_s23 + $0x168] sm:$0xff]  ;;  %v212_v62 = vld [vmem:[%s1347_s23 + $0x60] sm:$0xff]  ;;  %v833_v37 = vpack.c.bf16 %v287_v30, %v286_v29 }
  0x23   : > { %814 = vmatprep.subr.bf16.mxu0 %v1241_v3  ;;  %852 = vmatprep.subr.bf16.mxu1 %v1241_v3  ;;  %v1059_v59 = vpack.i.bf16 %v211_v54, %v210_v53  ;;  %v213_v63 = vld [vmem:[%s1347_s23 + $0x68] sm:$0xff]  ;;  %v949_v4 = vpack.i.bf16 %v245_v61, %v244_v60  ;;  %v246_v6 = vld [vmem:[%s1347_s23 + $0x170] sm:$0xff]  ;;  %v247_v7 = vld [vmem:[%s1347_s23 + $0x178] sm:$0xff] }
  0x24   : > { %v1061_v5 = vpack.i.bf16 %v213_v63, %v212_v62  ;;  %v214_v8 = vld [vmem:[%s1347_s23 + $0x70] sm:$0xff]  ;;  %v215_v9 = vld [vmem:[%s1347_s23 + $0x78] sm:$0xff]  ;;  %v951_v13 = vpack.i.bf16 %v247_v7, %v246_v6  ;;  %v248_v15 = vld [vmem:[%s1347_s23 + $0x180] sm:$0xff] }
  0x25   : > { %942 = vxpose.xlu0.b32.cont [3/16] %v941_v31, 128  ;;  %816 = vmatpush1.bf16.msra.mxu0 %v815_v46  ;;  %v282_v11 = vld [vmem:[%s1651_s1 + $0x90] sm:$0xff]  ;;  %v1063_v14 = vpack.i.bf16 %v215_v9, %v214_v8  ;;  %v249_v16 = vld [vmem:[%s1347_s23 + $0x188] sm:$0xff]  ;;  %v216_v17 = vld [vmem:[%s1347_s23 + $0x80] sm:$0xff] }
  0x26   : > { %1054 = vxpose.xlu1.b32.cont [3/16] %v1053_v32, 128  ;;  %868 = vmatpush1.bf16.msra.mxu1 %v815_v46  ;;  %v217_v18 = vld [vmem:[%s1347_s23 + $0x88] sm:$0xff]  ;;  %v827_v19 = vpack.c.bf16 %v283_v12, %v282_v11  ;;  %v284_v20 = vld [vmem:[%s1651_s1 + $0xa0] sm:$0xff]  ;;  %v953_v22 = vpack.i.bf16 %v249_v16, %v248_v15  ;;  %v250_v24 = vld [vmem:[%s1347_s23 + $0x190] sm:$0xff]  ;;  %v836_v46 = vpack.c.bf16 %v289_v39, %v288_v38 }
  0x27   : > { %817 = vmatprep.subr.bf16.mxu0 %v1241_v3  ;;  %853 = vmatprep.subr.bf16.mxu1 %v1241_v3  ;;  %v1065_v23 = vpack.i.bf16 %v217_v18, %v216_v17  ;;  %v251_v25 = vld [vmem:[%s1347_s23 + $0x198] sm:$0xff]  ;;  %v218_v26 = vld [vmem:[%s1347_s23 + $0x90] sm:$0xff]  ;;  %v830_v28 = vpack.c.bf16 %v285_v21, %v284_v20  ;;  %v252_v33 = vld [vmem:[%s1347_s23 + $0x1a0] sm:$0xff] }
  0x28   : > { %v219_v27 = vld [vmem:[%s1347_s23 + $0x98] sm:$0xff]  ;;  %v955_v31 = vpack.i.bf16 %v251_v25, %v250_v24  ;;  %v253_v34 = vld [vmem:[%s1347_s23 + $0x1a8] sm:$0xff]  ;;  %v220_v35 = vld [vmem:[%s1347_s23 + $0xa0] sm:$0xff] }
  0x29   : > { %944 = vxpose.xlu0.b32.cont [4/16] %v943_v40, 128  ;;  %819 = vmatpush1.bf16.msra.mxu0 %v818_v55  ;;  %v1067_v32 = vpack.i.bf16 %v219_v27, %v218_v26  ;;  %v221_v36 = vld [vmem:[%s1347_s23 + $0xa8] sm:$0xff]  ;;  %v957_v40 = vpack.i.bf16 %v253_v34, %v252_v33  ;;  %v254_v42 = vld [vmem:[%s1347_s23 + $0x1b0] sm:$0xff]  ;;  %v255_v43 = vld [vmem:[%s1347_s23 + $0x1b8] sm:$0xff] }
  0x2a   : > { %1056 = vxpose.xlu1.b32.cont [4/16] %v1055_v41, 128  ;;  %869 = vmatpush1.bf16.msra.mxu1 %v818_v55  ;;  %v1069_v41 = vpack.i.bf16 %v221_v36, %v220_v35  ;;  %v222_v44 = vld [vmem:[%s1347_s23 + $0xb0] sm:$0xff]  ;;  %v223_v45 = vld [vmem:[%s1347_s23 + $0xb8] sm:$0xff]  ;;  %v256_v51 = vld [vmem:[%s1347_s23 + $0x1c0] sm:$0xff]  ;;  %v839_v55 = vpack.c.bf16 %v291_v48, %v290_v47 }
  0x2b   : > { %820 = vmatprep.subr.bf16.mxu0 %v1241_v3  ;;  %854 = vmatprep.subr.bf16.mxu1 %v1241_v3  ;;  %v257_v52 = vld [vmem:[%s1347_s23 + $0x1c8] sm:$0xff]  ;;  %v224_v53 = vld [vmem:[%s1347_s23 + $0xc0] sm:$0xff]  ;;  %v258_v60 = vld [vmem:[%s1347_s23 + $0x1d0] sm:$0xff] }
  0x2c   : > { %v225_v54 = vld [vmem:[%s1347_s23 + $0xc8] sm:$0xff]  ;;  %v259_v61 = vld [vmem:[%s1347_s23 + $0x1d8] sm:$0xff]  ;;  %v226_v62 = vld [vmem:[%s1347_s23 + $0xd0] sm:$0xff] }
  0x2d   : > { %946 = vxpose.xlu0.b32.cont [5/16] %v945_v49, 128  ;;  %822 = vmatpush1.bf16.msra.mxu0 %v821_v0  ;;  %v959_v49 = vpack.i.bf16 %v255_v43, %v254_v42  ;;  %v227_v63 = vld [vmem:[%s1347_s23 + $0xd8] sm:$0xff]  ;;  %v294_v1 = vld [vmem:[%s1651_s1 + $0xf0] sm:$0xff]  ;;  %v260_v6 = vld [vmem:[%s1347_s23 + $0x1e0] sm:$0xff] }
  0x2e   : > { %1058 = vxpose.xlu1.b32.cont [5/16] %v1057_v50, 128  ;;  %870 = vmatpush1.bf16.msra.mxu1 %v821_v0  ;;  %v1071_v50 = vpack.i.bf16 %v223_v45, %v222_v44  ;;  %v842_v0 = vpack.c.bf16 %v293_v57, %v292_v56  ;;  %v295_v2 = vld [vmem:[%s1651_s1 + $0xf8] sm:$0xff]  ;;  %v261_v7 = vld [vmem:[%s1347_s23 + $0x1e8] sm:$0xff]  ;;  %v228_v8 = vld [vmem:[%s1347_s23 + $0xe0] sm:$0xff] }
  0x2f   : > { %823 = vmatprep.subr.bf16.mxu0 %v1241_v3  ;;  %855 = vmatprep.subr.bf16.mxu1 %v1241_v3  ;;  %v229_v9 = vld [vmem:[%s1347_s23 + $0xe8] sm:$0xff]  ;;  %v965_v11 = vpack.i.bf16 %v261_v7, %v260_v6  ;;  %v230_v15 = vld [vmem:[%s1347_s23 + $0xf0] sm:$0xff]  ;;  %v231_v16 = vld [vmem:[%s1347_s23 + $0xf8] sm:$0xff] }
  0x30   : > { %v1077_v12 = vpack.i.bf16 %v229_v9, %v228_v8  ;;  %v1079_v18 = vpack.i.bf16 %v231_v16, %v230_v15 }
  0x31   : > { %948 = vxpose.xlu0.b32.cont [6/16] %v947_v58, 128  ;;  %825 = vmatpush1.bf16.msra.mxu0 %v824_v10  ;;  %v961_v58 = vpack.i.bf16 %v257_v52, %v256_v51 }
  0x32   : > { %1060 = vxpose.xlu1.b32.cont [6/16] %v1059_v59, 128  ;;  %871 = vmatpush1.bf16.msra.mxu1 %v824_v10  ;;  %v1073_v59 = vpack.i.bf16 %v225_v54, %v224_v53  ;;  %v845_v10 = vpack.c.bf16 %v295_v2, %v294_v1 }
  0x33   : > { %826 = vmatprep.subr.bf16.mxu0 %v1241_v3  ;;  %856 = vmatprep.subr.bf16.mxu1 %v1241_v3 }
  0x35   : > { %950 = vxpose.xlu0.b32.cont [7/16] %v949_v4, 128  ;;  %828 = vmatpush1.bf16.msra.mxu0 %v827_v19  ;;  %v963_v4 = vpack.i.bf16 %v259_v61, %v258_v60 }
  0x36   : > { %1062 = vxpose.xlu1.b32.cont [7/16] %v1061_v5, 128  ;;  %872 = vmatpush1.bf16.msra.mxu1 %v827_v19  ;;  %v1075_v5 = vpack.i.bf16 %v227_v63, %v226_v62 }
  0x37   : > { %829 = vmatprep.subr.bf16.mxu0 %v1241_v3  ;;  %857 = vmatprep.subr.bf16.mxu1 %v1241_v3 }
  0x39   : > { %952 = vxpose.xlu0.b32.cont [8/16] %v951_v13, 128  ;;  %831 = vmatpush1.bf16.msra.mxu0 %v830_v28  ;;  %v262_v13 = vld [vmem:[%s1347_s23 + $0x1f0] sm:$0xff] }
  0x3a   : > { %1064 = vxpose.xlu1.b32.cont [8/16] %v1063_v14, 128  ;;  %873 = vmatpush1.bf16.msra.mxu1 %v830_v28  ;;  %v263_v14 = vld [vmem:[%s1347_s23 + $0x1f8] sm:$0xff]  ;;  %s186_s23 = sand.u32 1, %s1223_s13  }
  0x3b   : > { %832 = vmatprep.subr.bf16.mxu0 %v1241_v3  ;;  %858 = vmatprep.subr.bf16.mxu1 %v1241_v3  ;;  %v967_v17 = vpack.i.bf16 %v263_v14, %v262_v13  ;;  %s788_s30 = sshll.u32 %s186_s23, 8  ;;  %s1604_s15 = scalar_lea.sflag [#allocation3], %s186_s23 }
  0x3c   : > { %s1529_s6 = scalar_lea.vmem [#allocation2], %s788_s30 }
  0x3d   : > { %954 = vxpose.xlu0.b32.cont [9/16] %v953_v22, 128  ;;  %834 = vmatpush1.bf16.msra.mxu0 %v833_v37  ;;  %s704_s8 = sshll.u32 %s1529_s6, 4  ;;  %s1596_s8 = int_to_ptr.vmem [resolvable:$true] %s704_s8 }
  0x3e   : > { %1066 = vxpose.xlu1.b32.cont [9/16] %v1065_v23, 128  ;;  %874 = vmatpush1.bf16.msra.mxu1 %v833_v37  ;;  %s1161_s18 = scalar_lea.vmem %s1596_s8, 4096  ;;  %p1168_p1 = scmp.lt.s32.totalorder %s1596_s8, %s1166_s21 }
  0x3f   : > { %835 = vmatprep.subr.bf16.mxu0 %v1241_v3  ;;  %859 = vmatprep.subr.bf16.mxu1 %v1241_v3  ;;  %p1162_p12 = scmp.ne.s32.totalorder %s1596_s8, %s1161_s18  ;;  %p1169_p2 = scmp.lt.s32.totalorder %s1167_s26, %s1161_s18 }
  0x41   : > { %956 = vxpose.xlu0.b32.cont [10/16] %v955_v31, 128  ;;  %837 = vmatpush1.bf16.msra.mxu0 %v836_v46  ;;  %p1163_p13 = pnand %p1162_p12, %p1305_p4  ;;  %p1170_p3 = por %p1169_p2, %p1168_p1 }
  0x42   : > { %1068 = vxpose.xlu1.b32.cont [10/16] %v1067_v32, 128  ;;  %875 = vmatpush1.bf16.msra.mxu1 %v836_v46 }
  0x43   : > { %838 = vmatprep.subr.bf16.mxu0 %v1241_v3  ;;  %860 = vmatprep.subr.bf16.mxu1 %v1241_v3  ;;  %p1164_p0 = pneg %p1163_p13 }
  0x45   : > { %958 = vxpose.xlu0.b32.cont [11/16] %v957_v40, 128  ;;  %840 = vmatpush1.bf16.msra.mxu0 %v839_v55  ;;  %p1171_p5 = pnand %p1170_p3, %p1164_p0 }
  0x46   : > { %1070 = vxpose.xlu1.b32.cont [11/16] %v1069_v41, 128  ;;  %876 = vmatpush1.bf16.msra.mxu1 %v839_v55 }
  0x47   : > { %841 = vmatprep.subr.bf16.mxu0 %v1241_v3  ;;  %861 = vmatprep.subr.bf16.mxu1 %v1241_v3 }
  0x49   : > { %960 = vxpose.xlu0.b32.cont [12/16] %v959_v49, 128  ;;  %843 = vmatpush1.bf16.msra.mxu0 %v842_v0 }
  0x4a   : > { %1072 = vxpose.xlu1.b32.cont [12/16] %v1071_v50, 128  ;;  %877 = vmatpush1.bf16.msra.mxu1 %v842_v0 }
  0x4b   : > { %844 = vmatprep.subr.bf16.mxu0 %v1241_v3  ;;  %862 = vmatprep.subr.bf16.mxu1 %v1241_v3 }
  0x4d   : > { %962 = vxpose.xlu0.b32.cont [13/16] %v961_v58, 128  ;;  %846 = vmatpush1.bf16.msra.mxu0 %v845_v10 }
  0x4e   : > { %1074 = vxpose.xlu1.b32.cont [13/16] %v1073_v59, 128  ;;  %878 = vmatpush1.bf16.msra.mxu1 %v845_v10 }
  0x51   : > { %964 = vxpose.xlu0.b32.cont [14/16] %v963_v4, 128 }
  0x52   : > { %1076 = vxpose.xlu1.b32.cont [14/16] %v1075_v5, 128 }
  0x55   : > { %966 = vxpose.xlu0.b32.cont [15/16] %v965_v11, 128 }
  0x56   : > { %1078 = vxpose.xlu1.b32.cont [15/16] %v1077_v12, 128 }
  0x59   : > { %968 = vxpose.xlu0.b32.end [16/16] %v967_v17, 128 }
  0x5a   : > { %1080 = vxpose.xlu1.b32.end [16/16] %v1079_v18, 128 }
  0x9d   : > { %v969_v19 = vpop.trf.xlu0 }
  0x9e   : > { %v1081_v20 = vpop.trf.xlu1  ;;  %v970_v21 = vunpack.i.l.bf16 %v969_v19  ;;  %v973_v3 = vunpack.i.h.bf16 %v969_v19 }
  0x9f   : > { %v1082_v22 = vunpack.i.l.bf16 %v1081_v20  ;;  %v1085_v23 = vunpack.i.h.bf16 %v1081_v20 }
  0xa0   : > { %495 = vmatprep.mubr.f32.mxu0 %v970_v21  ;;  %575 = vmatprep.mubr.f32.mxu1 %v973_v3 }
  0xa1   : > { %v974_v24 = vpop.trf.xlu0  ;;  %496 = vmatmul.mubr.f32.vlgmr.msra.gmra.mrb[0].mxu0 %v1082_v22  ;;  %576 = vmatmul.mubr.f32.vlgmr.msra.gmra.mrb[0].mxu1 %v1085_v23 }
  0xa2   : > { %v1086_v25 = vpop.trf.xlu1  ;;  %v975_v26 = vunpack.i.l.bf16 %v974_v24  ;;  %v978_v27 = vunpack.i.h.bf16 %v974_v24 }
  0xa3   : > { %v1087_v28 = vunpack.i.l.bf16 %v1086_v25  ;;  %v1090_v29 = vunpack.i.h.bf16 %v1086_v25 }
  0xa4   : > { %500 = vmatprep.mubr.f32.mxu0 %v975_v26  ;;  %580 = vmatprep.mubr.f32.mxu1 %v978_v27 }
  0xa5   : > { %v979_v30 = vpop.trf.xlu0  ;;  %501 = vmatmul.mubr.f32.gmra.mrb[2].mxu0 %v1087_v28  ;;  %581 = vmatmul.mubr.f32.gmra.mrb[2].mxu1 %v1090_v29 }
  0xa6   : > { %v1091_v31 = vpop.trf.xlu1  ;;  %v980_v32 = vunpack.i.l.bf16 %v979_v30  ;;  %v983_v33 = vunpack.i.h.bf16 %v979_v30 }
  0xa7   : > { %v1092_v34 = vunpack.i.l.bf16 %v1091_v31  ;;  %v1095_v35 = vunpack.i.h.bf16 %v1091_v31 }
  0xa8   : > { %505 = vmatprep.mubr.f32.mxu0 %v980_v32  ;;  %585 = vmatprep.mubr.f32.mxu1 %v983_v33 }
  0xa9   : > { %v984_v36 = vpop.trf.xlu0  ;;  %506 = vmatmul.mubr.f32.gmra.mrb[4].mxu0 %v1092_v34  ;;  %586 = vmatmul.mubr.f32.gmra.mrb[4].mxu1 %v1095_v35 }
  0xaa   : > { %v1096_v37 = vpop.trf.xlu1  ;;  %v985_v38 = vunpack.i.l.bf16 %v984_v36  ;;  %v988_v39 = vunpack.i.h.bf16 %v984_v36 }
  0xab   : > { %v1097_v40 = vunpack.i.l.bf16 %v1096_v37  ;;  %v1100_v41 = vunpack.i.h.bf16 %v1096_v37 }
  0xac   : > { %510 = vmatprep.mubr.f32.mxu0 %v985_v38  ;;  %590 = vmatprep.mubr.f32.mxu1 %v988_v39 }
  0xad   : > { %v989_v42 = vpop.trf.xlu0  ;;  %511 = vmatmul.mubr.f32.gmra.mrb[6].mxu0 %v1097_v40  ;;  %591 = vmatmul.mubr.f32.gmra.mrb[6].mxu1 %v1100_v41 }
  0xae   : > { %v1101_v43 = vpop.trf.xlu1  ;;  %v990_v44 = vunpack.i.l.bf16 %v989_v42  ;;  %v993_v45 = vunpack.i.h.bf16 %v989_v42 }
  0xaf   : > { %v1102_v46 = vunpack.i.l.bf16 %v1101_v43  ;;  %v1105_v47 = vunpack.i.h.bf16 %v1101_v43 }
  0xb0   : > { %515 = vmatprep.mubr.f32.mxu0 %v990_v44  ;;  %595 = vmatprep.mubr.f32.mxu1 %v993_v45 }
  0xb1   : > { %v994_v48 = vpop.trf.xlu0  ;;  %516 = vmatmul.mubr.f32.gmra.mrb[8].mxu0 %v1102_v46  ;;  %596 = vmatmul.mubr.f32.gmra.mrb[8].mxu1 %v1105_v47 }
  0xb2   : > { %v1106_v49 = vpop.trf.xlu1  ;;  %v995_v50 = vunpack.i.l.bf16 %v994_v48  ;;  %v998_v51 = vunpack.i.h.bf16 %v994_v48 }
  0xb3   : > { %v1107_v52 = vunpack.i.l.bf16 %v1106_v49  ;;  %v1110_v53 = vunpack.i.h.bf16 %v1106_v49 }
  0xb4   : > { %520 = vmatprep.mubr.f32.mxu0 %v995_v50  ;;  %600 = vmatprep.mubr.f32.mxu1 %v998_v51  ;;  %v1525_v50 = vld [vmem:[%s1652_s2] ss:$0 sm:$0xff] }
  0xb5   : > { %v999_v54 = vpop.trf.xlu0  ;;  %521 = vmatmul.mubr.f32.gmra.mrb[10].mxu0 %v1107_v52  ;;  %601 = vmatmul.mubr.f32.gmra.mrb[10].mxu1 %v1110_v53 }
  0xb6   : > { %v1111_v55 = vpop.trf.xlu1  ;;  %v1000_v56 = vunpack.i.l.bf16 %v999_v54  ;;  %v1003_v57 = vunpack.i.h.bf16 %v999_v54 }
  0xb7   : > { %v1112_v58 = vunpack.i.l.bf16 %v1111_v55  ;;  %v1115_v59 = vunpack.i.h.bf16 %v1111_v55 }
  0xb8   : > { %525 = vmatprep.mubr.f32.mxu0 %v1000_v56  ;;  %605 = vmatprep.mubr.f32.mxu1 %v1003_v57 }
  0xb9   : > { %v1004_v60 = vpop.trf.xlu0  ;;  %526 = vmatmul.mubr.f32.gmra.mrb[12].mxu0 %v1112_v58  ;;  %606 = vmatmul.mubr.f32.gmra.mrb[12].mxu1 %v1115_v59 }
  0xba   : > { %v1116_v61 = vpop.trf.xlu1  ;;  %v1005_v62 = vunpack.i.l.bf16 %v1004_v60  ;;  %v1008_v63 = vunpack.i.h.bf16 %v1004_v60 }
  0xbb   : > { %v1117_v0 = vunpack.i.l.bf16 %v1116_v61  ;;  %v1120_v1 = vunpack.i.h.bf16 %v1116_v61 }
  0xbc   : > { %530 = vmatprep.mubr.f32.mxu0 %v1005_v62  ;;  %610 = vmatprep.mubr.f32.mxu1 %v1008_v63 }
  0xbd   : > { %v1009_v2 = vpop.trf.xlu0  ;;  %531 = vmatmul.mubr.f32.gmra.mrb[14].mxu0 %v1117_v0  ;;  %611 = vmatmul.mubr.f32.gmra.mrb[14].mxu1 %v1120_v1 }
  0xbe   : > { %v1121_v4 = vpop.trf.xlu1  ;;  %v1010_v5 = vunpack.i.l.bf16 %v1009_v2  ;;  %v1013_v6 = vunpack.i.h.bf16 %v1009_v2 }
  0xbf   : > { %v1122_v7 = vunpack.i.l.bf16 %v1121_v4  ;;  %v1125_v8 = vunpack.i.h.bf16 %v1121_v4 }
  0xc0   : > { %535 = vmatprep.mubr.f32.mxu0 %v1010_v5  ;;  %615 = vmatprep.mubr.f32.mxu1 %v1013_v6 }
  0xc1   : > { %v1014_v9 = vpop.trf.xlu0  ;;  %536 = vmatmul.mubr.f32.gmra.mrb[16].mxu0 %v1122_v7  ;;  %616 = vmatmul.mubr.f32.gmra.mrb[16].mxu1 %v1125_v8 }
  0xc2   : > { %v1126_v10 = vpop.trf.xlu1  ;;  %v1015_v11 = vunpack.i.l.bf16 %v1014_v9  ;;  %v1018_v12 = vunpack.i.h.bf16 %v1014_v9 }
  0xc3   : > { %v1127_v13 = vunpack.i.l.bf16 %v1126_v10  ;;  %v1130_v14 = vunpack.i.h.bf16 %v1126_v10 }
  0xc4   : > { %540 = vmatprep.mubr.f32.mxu0 %v1015_v11  ;;  %620 = vmatprep.mubr.f32.mxu1 %v1018_v12 }
  0xc5   : > { %v1019_v15 = vpop.trf.xlu0  ;;  %541 = vmatmul.mubr.f32.gmra.mrb[18].mxu0 %v1127_v13  ;;  %621 = vmatmul.mubr.f32.gmra.mrb[18].mxu1 %v1130_v14 }
  0xc6   : > { %v1131_v16 = vpop.trf.xlu1  ;;  %v1020_v17 = vunpack.i.l.bf16 %v1019_v15  ;;  %v1023_v18 = vunpack.i.h.bf16 %v1019_v15 }
  0xc7   : > { %v1132_v19 = vunpack.i.l.bf16 %v1131_v16  ;;  %v1135_v20 = vunpack.i.h.bf16 %v1131_v16 }
  0xc8   : > { %545 = vmatprep.mubr.f32.mxu0 %v1020_v17  ;;  %625 = vmatprep.mubr.f32.mxu1 %v1023_v18 }
  0xc9   : > { %v1024_v21 = vpop.trf.xlu0  ;;  %546 = vmatmul.mubr.f32.gmra.mrb[20].mxu0 %v1132_v19  ;;  %626 = vmatmul.mubr.f32.gmra.mrb[20].mxu1 %v1135_v20 }
  0xca   : > { %v1136_v3 = vpop.trf.xlu1  ;;  %v1025_v22 = vunpack.i.l.bf16 %v1024_v21  ;;  %v1028_v23 = vunpack.i.h.bf16 %v1024_v21 }
  0xcb   : > { %v1137_v24 = vunpack.i.l.bf16 %v1136_v3  ;;  %v1140_v25 = vunpack.i.h.bf16 %v1136_v3 }
  0xcc   : > { %550 = vmatprep.mubr.f32.mxu0 %v1025_v22  ;;  %630 = vmatprep.mubr.f32.mxu1 %v1028_v23 }
  0xcd   : > { %v1029_v26 = vpop.trf.xlu0  ;;  %551 = vmatmul.mubr.f32.gmra.mrb[22].mxu0 %v1137_v24  ;;  %631 = vmatmul.mubr.f32.gmra.mrb[22].mxu1 %v1140_v25 }
  0xce   : > { %v1141_v27 = vpop.trf.xlu1  ;;  %v1030_v28 = vunpack.i.l.bf16 %v1029_v26  ;;  %v1033_v29 = vunpack.i.h.bf16 %v1029_v26 }
  0xcf   : > { %v1142_v30 = vunpack.i.l.bf16 %v1141_v27  ;;  %v1145_v31 = vunpack.i.h.bf16 %v1141_v27 }
  0xd0   : > { %555 = vmatprep.mubr.f32.mxu0 %v1030_v28  ;;  %635 = vmatprep.mubr.f32.mxu1 %v1033_v29 }
  0xd1   : > { %v1034_v32 = vpop.trf.xlu0  ;;  %556 = vmatmul.mubr.f32.gmra.mrb[24].mxu0 %v1142_v30  ;;  %636 = vmatmul.mubr.f32.gmra.mrb[24].mxu1 %v1145_v31 }
  0xd2   : > { %v1146_v33 = vpop.trf.xlu1  ;;  %v1035_v34 = vunpack.i.l.bf16 %v1034_v32  ;;  %v1038_v35 = vunpack.i.h.bf16 %v1034_v32 }
  0xd3   : > { %v1147_v36 = vunpack.i.l.bf16 %v1146_v33  ;;  %v1150_v37 = vunpack.i.h.bf16 %v1146_v33 }
  0xd4   : > { %560 = vmatprep.mubr.f32.mxu0 %v1035_v34  ;;  %640 = vmatprep.mubr.f32.mxu1 %v1038_v35 }
  0xd5   : > { %v1039_v38 = vpop.trf.xlu0  ;;  %561 = vmatmul.mubr.f32.gmra.mrb[26].mxu0 %v1147_v36  ;;  %641 = vmatmul.mubr.f32.gmra.mrb[26].mxu1 %v1150_v37 }
  0xd6   : > { %v1151_v39 = vpop.trf.xlu1  ;;  %v1040_v40 = vunpack.i.l.bf16 %v1039_v38  ;;  %v1043_v41 = vunpack.i.h.bf16 %v1039_v38 }
  0xd7   : > { %v1152_v42 = vunpack.i.l.bf16 %v1151_v39  ;;  %v1155_v43 = vunpack.i.h.bf16 %v1151_v39 }
  0xd8   : > { %565 = vmatprep.mubr.f32.mxu0 %v1040_v40  ;;  %645 = vmatprep.mubr.f32.mxu1 %v1043_v41 }
  0xd9   : > { %v1044_v44 = vpop.trf.xlu0  ;;  %566 = vmatmul.mubr.f32.gmra.mrb[28].mxu0 %v1152_v42  ;;  %646 = vmatmul.mubr.f32.gmra.mrb[28].mxu1 %v1155_v43 }
  0xda   : > { %v1048_v45 = vunpack.i.h.bf16 %v1044_v44  ;;  %v1045_v46 = vunpack.i.l.bf16 %v1044_v44  ;;  %v1156_v47 = vpop.trf.xlu1 }
  0xdb   : > { %v1160_v48 = vunpack.i.h.bf16 %v1156_v47  ;;  %v1157_v49 = vunpack.i.l.bf16 %v1156_v47 }
  0xdc   : > { %570 = vmatprep.mubr.f32.mxu0 %v1045_v46  ;;  %650 = vmatprep.mubr.f32.mxu1 %v1048_v45 }
  0xdd   : > { %571 = vmatmul.mubr.f32.gmra.mrb[30].mxu0 %v1157_v49  ;;  %651 = vmatmul.mubr.f32.gmra.mrb[30].mxu1 %v1160_v48 }
 0x174   : > { %v497_v51 = vpop.f32.mrb[0].mxu0  ;;  %v577_v52 = vpop.f32.mrb[0].mxu1 }
 0x175   : > { %v498_v53 = vadd.f32 %v1525_v50, %v497_v51  ;;  %v578_v54 = vadd.f32 %v1525_v50, %v577_v52  ;;  %v499_v55 = vpop.f32.mrb[1].mxu0  ;;  %v579_v56 = vpop.f32.mrb[1].mxu1 }
 0x177   : > { %656 = vst [vmem:[%s1529_s6] sm:$0xff] %v498_v53  ;;  %672 = vst [vmem:[%s1529_s6 + $0x80] sm:$0xff] %v578_v54 }
 0x178   : > { %v502_v57 = vpop.f32.mrb[2].mxu0  ;;  %v582_v58 = vpop.f32.mrb[2].mxu1 }
 0x179   : > { %v503_v59 = vadd.f32 %v1525_v50, %v502_v57  ;;  %v583_v60 = vadd.f32 %v1525_v50, %v582_v58  ;;  %v504_v61 = vpop.f32.mrb[3].mxu0  ;;  %v584_v62 = vpop.f32.mrb[3].mxu1 }
 0x17b   : > { %657 = vst [vmem:[%s1529_s6 + $0x8] sm:$0xff] %v503_v59  ;;  %673 = vst [vmem:[%s1529_s6 + $0x88] sm:$0xff] %v583_v60 }
 0x17c   : > { %v507_v63 = vpop.f32.mrb[4].mxu0  ;;  %v587_v0 = vpop.f32.mrb[4].mxu1 }
 0x17d   : > { %v508_v1 = vadd.f32 %v1525_v50, %v507_v63  ;;  %v588_v2 = vadd.f32 %v1525_v50, %v587_v0  ;;  %v509_v4 = vpop.f32.mrb[5].mxu0  ;;  %v589_v5 = vpop.f32.mrb[5].mxu1 }
 0x17f   : > { %658 = vst [vmem:[%s1529_s6 + $0x10] sm:$0xff] %v508_v1  ;;  %674 = vst [vmem:[%s1529_s6 + $0x90] sm:$0xff] %v588_v2 }
 0x180   : > { %v512_v6 = vpop.f32.mrb[6].mxu0  ;;  %v592_v7 = vpop.f32.mrb[6].mxu1 }
 0x181   : > { %v513_v8 = vadd.f32 %v1525_v50, %v512_v6  ;;  %v593_v9 = vadd.f32 %v1525_v50, %v592_v7  ;;  %v514_v10 = vpop.f32.mrb[7].mxu0  ;;  %v594_v11 = vpop.f32.mrb[7].mxu1 }
 0x183   : > { %659 = vst [vmem:[%s1529_s6 + $0x18] sm:$0xff] %v513_v8  ;;  %675 = vst [vmem:[%s1529_s6 + $0x98] sm:$0xff] %v593_v9 }
 0x184   : > { %v517_v12 = vpop.f32.mrb[8].mxu0  ;;  %v597_v13 = vpop.f32.mrb[8].mxu1 }
 0x185   : > { %v518_v14 = vadd.f32 %v1525_v50, %v517_v12  ;;  %v598_v15 = vadd.f32 %v1525_v50, %v597_v13  ;;  %v519_v16 = vpop.f32.mrb[9].mxu0  ;;  %v599_v17 = vpop.f32.mrb[9].mxu1 }
 0x187   : > { %660 = vst [vmem:[%s1529_s6 + $0x20] sm:$0xff] %v518_v14  ;;  %676 = vst [vmem:[%s1529_s6 + $0xa0] sm:$0xff] %v598_v15 }
 0x188   : > { %v522_v18 = vpop.f32.mrb[10].mxu0  ;;  %v602_v19 = vpop.f32.mrb[10].mxu1 }
 0x189   : > { %v523_v20 = vadd.f32 %v1525_v50, %v522_v18  ;;  %v603_v21 = vadd.f32 %v1525_v50, %v602_v19  ;;  %v524_v3 = vpop.f32.mrb[11].mxu0  ;;  %v604_v22 = vpop.f32.mrb[11].mxu1 }
 0x18b   : > { %661 = vst [vmem:[%s1529_s6 + $0x28] sm:$0xff] %v523_v20  ;;  %677 = vst [vmem:[%s1529_s6 + $0xa8] sm:$0xff] %v603_v21 }
 0x18c   : > { %v527_v23 = vpop.f32.mrb[12].mxu0  ;;  %v607_v24 = vpop.f32.mrb[12].mxu1 }
 0x18d   : > { %v528_v25 = vadd.f32 %v1525_v50, %v527_v23  ;;  %v608_v26 = vadd.f32 %v1525_v50, %v607_v24  ;;  %v529_v27 = vpop.f32.mrb[13].mxu0  ;;  %v609_v28 = vpop.f32.mrb[13].mxu1 }
 0x18f   : > { %662 = vst [vmem:[%s1529_s6 + $0x30] sm:$0xff] %v528_v25  ;;  %678 = vst [vmem:[%s1529_s6 + $0xb0] sm:$0xff] %v608_v26 }
 0x190   : > { %v532_v29 = vpop.f32.mrb[14].mxu0  ;;  %v612_v30 = vpop.f32.mrb[14].mxu1 }
 0x191   : > { %v533_v31 = vadd.f32 %v1525_v50, %v532_v29  ;;  %v613_v32 = vadd.f32 %v1525_v50, %v612_v30  ;;  %v534_v33 = vpop.f32.mrb[15].mxu0  ;;  %v614_v34 = vpop.f32.mrb[15].mxu1 }
 0x193   : > { %663 = vst [vmem:[%s1529_s6 + $0x38] sm:$0xff] %v533_v31  ;;  %679 = vst [vmem:[%s1529_s6 + $0xb8] sm:$0xff] %v613_v32 }
 0x194   : > { %v537_v35 = vpop.f32.mrb[16].mxu0  ;;  %v617_v36 = vpop.f32.mrb[16].mxu1 }
 0x195   : > { %v538_v37 = vadd.f32 %v1525_v50, %v537_v35  ;;  %v618_v38 = vadd.f32 %v1525_v50, %v617_v36  ;;  %v539_v39 = vpop.f32.mrb[17].mxu0  ;;  %v619_v40 = vpop.f32.mrb[17].mxu1 }
 0x197   : > { %664 = vst [vmem:[%s1529_s6 + $0x40] sm:$0xff] %v538_v37  ;;  %680 = vst [vmem:[%s1529_s6 + $0xc0] sm:$0xff] %v618_v38 }
 0x198   : > { %v542_v41 = vpop.f32.mrb[18].mxu0  ;;  %v622_v42 = vpop.f32.mrb[18].mxu1 }
 0x199   : > { %v543_v43 = vadd.f32 %v1525_v50, %v542_v41  ;;  %v623_v44 = vadd.f32 %v1525_v50, %v622_v42  ;;  %v544_v45 = vpop.f32.mrb[19].mxu0  ;;  %v624_v46 = vpop.f32.mrb[19].mxu1 }
 0x19b   : > { %665 = vst [vmem:[%s1529_s6 + $0x48] sm:$0xff] %v543_v43  ;;  %681 = vst [vmem:[%s1529_s6 + $0xc8] sm:$0xff] %v623_v44 }
 0x19c   : > { %v547_v47 = vpop.f32.mrb[20].mxu0  ;;  %v627_v48 = vpop.f32.mrb[20].mxu1 }
 0x19d   : > { %v548_v49 = vadd.f32 %v1525_v50, %v547_v47  ;;  %v628_v51 = vadd.f32 %v1525_v50, %v627_v48  ;;  %v549_v52 = vpop.f32.mrb[21].mxu0  ;;  %v629_v53 = vpop.f32.mrb[21].mxu1 }
 0x19f   : > { %666 = vst [vmem:[%s1529_s6 + $0x50] sm:$0xff] %v548_v49  ;;  %682 = vst [vmem:[%s1529_s6 + $0xd0] sm:$0xff] %v628_v51 }
 0x1a0   : > { %v552_v54 = vpop.f32.mrb[22].mxu0  ;;  %v632_v55 = vpop.f32.mrb[22].mxu1 }
 0x1a1   : > { %v553_v56 = vadd.f32 %v1525_v50, %v552_v54  ;;  %v633_v57 = vadd.f32 %v1525_v50, %v632_v55  ;;  %v554_v58 = vpop.f32.mrb[23].mxu0  ;;  %v634_v59 = vpop.f32.mrb[23].mxu1 }
 0x1a3   : > { %667 = vst [vmem:[%s1529_s6 + $0x58] sm:$0xff] %v553_v56  ;;  %683 = vst [vmem:[%s1529_s6 + $0xd8] sm:$0xff] %v633_v57 }
 0x1a4   : > { %v557_v60 = vpop.f32.mrb[24].mxu0  ;;  %v637_v61 = vpop.f32.mrb[24].mxu1 }
 0x1a5   : > { %v558_v62 = vadd.f32 %v1525_v50, %v557_v60  ;;  %v638_v63 = vadd.f32 %v1525_v50, %v637_v61  ;;  %v559_v0 = vpop.f32.mrb[25].mxu0  ;;  %v639_v1 = vpop.f32.mrb[25].mxu1 }
 0x1a7   : > { %668 = vst [vmem:[%s1529_s6 + $0x60] sm:$0xff] %v558_v62  ;;  %684 = vst [vmem:[%s1529_s6 + $0xe0] sm:$0xff] %v638_v63 }
 0x1a8   : > { %v562_v2 = vpop.f32.mrb[26].mxu0  ;;  %v642_v4 = vpop.f32.mrb[26].mxu1 }
 0x1a9   : > { %v563_v5 = vadd.f32 %v1525_v50, %v562_v2  ;;  %v643_v6 = vadd.f32 %v1525_v50, %v642_v4  ;;  %v564_v7 = vpop.f32.mrb[27].mxu0  ;;  %v644_v8 = vpop.f32.mrb[27].mxu1 }
 0x1ab   : > { %669 = vst [vmem:[%s1529_s6 + $0x68] sm:$0xff] %v563_v5  ;;  %685 = vst [vmem:[%s1529_s6 + $0xe8] sm:$0xff] %v643_v6 }
 0x1ac   : > { %v567_v9 = vpop.f32.mrb[28].mxu0  ;;  %v647_v10 = vpop.f32.mrb[28].mxu1 }
 0x1ad   : > { %v568_v11 = vadd.f32 %v1525_v50, %v567_v9  ;;  %v648_v12 = vadd.f32 %v1525_v50, %v647_v10  ;;  %v569_v13 = vpop.f32.mrb[29].mxu0  ;;  %v649_v14 = vpop.f32.mrb[29].mxu1 }
 0x1af   : > { %670 = vst [vmem:[%s1529_s6 + $0x70] sm:$0xff] %v568_v11  ;;  %686 = vst [vmem:[%s1529_s6 + $0xf0] sm:$0xff] %v648_v12 }
 0x1b0   : > { %v572_v15 = vpop.f32.mrb[30].mxu0  ;;  %v652_v16 = vpop.f32.mrb[30].mxu1 }
 0x1b1   : > { %v573_v17 = vadd.f32 %v1525_v50, %v572_v15  ;;  %v653_v18 = vadd.f32 %v1525_v50, %v652_v16  ;;  %v574_v19 = vpop.f32.mrb[31].mxu0  ;;  %v654_v20 = vpop.f32.mrb[31].mxu1 }
 0x1b3   : > { %671 = vst [vmem:[%s1529_s6 + $0x78] sm:$0xff] %v573_v17  ;;  %687 = vst [vmem:[%s1529_s6 + $0xf8] sm:$0xff] %v653_v18 }
 0x1b4   : > { %1174 = shalt.err (!%p1171_p5)
}
 0x1b5   : > { %s1175_s27 = scalar_lea.hbm %s1594_s11, 4096  ;;  %s1179_s23 = scalar_lea.hbm %s1653_s3, 8192 }
 0x1b6   : > { %p1176_p6 = scmp.ne.s32.totalorder %s1594_s11, %s1175_s27  ;;  %p1180_p10 = scmp.lt.u32.totalorder %s1594_s11, %s1653_s3 }
 0x1b7   : > { %p1181_p11 = scmp.lt.u32.totalorder %s1179_s23, %s1175_s27  ;;  %p1183_p13 = scmp.lt.u32.totalorder %s1175_s27, %s1594_s11 }
 0x1b8   : > { %p1177_p7 = pnand %p1176_p6, %p1305_p4 }
 0x1b9   : > { %p1182_p12 = por %p1181_p11, %p1180_p10 }
 0x1ba   : > { %p1178_p9 = pneg %p1177_p7 }
 0x1bb   : > { %p1184_p0 = por %p1183_p13, %p1182_p12 }
 0x1bd   : > { %p1185_p1 = pnand %p1184_p0, %p1178_p9 }
 0x1bf   : > { %1188 = shalt.err (!%p1185_p1)
}
 0x1c0   : > { %s1243_s5 = smov 128   ;;  %s1244_s6 = smov 8  }
 0x1c1   : > { %879 = dma.vmem_to_hbm [thread:$0]  (%p1305_p4), %s1596_s8, 4096, %s1594_s11, %s1604_s15, %s1243_s5, %s1243_s5, %s1244_s6  }
 0x1c2 PF: > { %p885_p2 = scmp.ge.s32.totalorder %s1239_s17, 2  ;;  %s719_s7 = sand.u32 1, %s1219_s12  }
 0x1c3   : > { %s720_s9 = scalar_lea.sflag [#allocation3], %s719_s7 }
 0x1c4   : > { %p882_p3 = pnand %p885_p2, %p1312_p8 }
 0x1c6   : > { %1214 = dma.done.wait (!%p882_p3), %s720_s9, 4096  }
 0x1c7   : > { %1216 = vsyncadd (!%p882_p3), %s720_s9, 4294963200  ;;  %s16_s17 = sadd.s32 1, %s1239_s17   ;;  %s1656_s12 = smov %s1223_s13 }
 0x1c8   : > { %p13_p5 = scmp.ge.s32.totalorder %s16_s17, 4   ;;  %s1657_s13 = smov %s1227_s14 }
 0x1c9   : > { %s1658_s14 = smov %s1318_s25  ;;  %s1659_s15 = smov %s1235_s16 }
 0x1ca   : > { %s1660_s16 = smov %s1662_s20  ;;  %15 = sbr.rel (!%p13_p5) target bundleno = 4 (0x4), region = 67 }
 0x1d1   :  { %725 = vsyncpa [#allocation3], 1 }
 0x1d2   :  { %727 = vsyncpa [#allocation3 + $0x1], 1 }

</bundles_post_ra>
